<compile_context>
chip_gen: v7x
topology: tpu7x:2x2x1
jax: 0.10.0
libtpu: 0.0.40
codegen_flags: <defaults>
</compile_context>

<pallas_src>
import functools

import numpy as np
import jax
import jax.numpy as jnp
from jax.experimental import pallas as pl
from jax.experimental.pallas import tpu as pltpu

# ImageNet normalization constants from the module.
_MEAN = np.array([0.485, 0.456, 0.406], dtype=np.float32)
_STD = np.array([0.229, 0.224, 0.225], dtype=np.float32)

_LANE = 128


@functools.lru_cache(maxsize=None)
def _bilinear_matrix(out_size: int, in_size: int) -> np.ndarray:
    """Dense (out_size, in_size) bilinear interpolation matrix (align_corners=False)."""
    # TODO(synk): torchvision Resize defaults to antialias=True on tensors; this is
    # plain 2-tap bilinear, so outputs can differ from torch when heavily downscaling.
    rows = np.arange(out_size)
    scale = in_size / out_size
    src = np.clip((rows + 0.5) * scale - 0.5, 0.0, in_size - 1.0)
    i0 = np.floor(src).astype(np.int64)
    i1 = np.minimum(i0 + 1, in_size - 1)
    frac = (src - i0).astype(np.float32)
    m = np.zeros((out_size, in_size), dtype=np.float32)
    np.add.at(m, (rows, i0), 1.0 - frac)
    np.add.at(m, (rows, i1), frac)
    return m


def _resize_crop_matrices(H: int, W: int, size: int, crop_seed: int):
    """(wy, wx) f32 numpy matrices with the random crop folded in.

    wy: (size, H), wx: (size, W), so per channel  out[c] = wy @ x[c] @ wx.T
    """
    # Resize: shorter edge -> size (torchvision int() semantics).
    if H <= W:
        new_h, new_w = size, int(size * W / H)
    else:
        new_h, new_w = int(size * H / W), size
    wy_full = _bilinear_matrix(new_h, H)
    wx_full = _bilinear_matrix(new_w, W)
    # RandomCrop(size): deterministic offsets from numpy RNG (no device round-trip).
    # TODO(synk): does not reproduce torch's RNG stream, only the crop semantics.
    rng = np.random.default_rng(crop_seed)
    top = int(rng.integers(0, new_h - size + 1))
    left = int(rng.integers(0, new_w - size + 1))
    return wy_full[top:top + size], wx_full[left:left + size]


def _make_kernel(n_ch: int, scales, shifts):
    scales = [float(s) for s in scales]
    shifts = [float(s) for s in shifts]

    def kernel(x_ref, wy_ref, wxt_ref, o_ref):
        wy = wy_ref[...]     # (size, H) bf16
        wxt = wxt_ref[...]   # (W, P)    bf16 (zero-padded columns past `size`)
        for c in range(n_ch):  # unrolled: all channels in one invocation
            # uint8 -> f32 -> bf16 in VMEM (values 0..255 are exact in bf16).
            xc = x_ref[c].astype(jnp.float32).astype(jnp.bfloat16)          # (H, W)
            t = jnp.dot(wy, xc, preferred_element_type=jnp.float32)         # (size, W) f32
            r = jnp.dot(t.astype(jnp.bfloat16), wxt,
                        preferred_element_type=jnp.float32)                 # (size, P) f32
            o_ref[c] = r * scales[c] + shifts[c]

    return kernel


def image_transform(samples_u8: jax.Array, size: int, crop_seed: int = 0) -> jax.Array:
    """Equivalent of ImageTransform.forward.

    samples_u8: uint8 array of shape (1, H, W, 3).
    Returns float32 array of shape (1, 3, size, size).
    """
    assert samples_u8.ndim == 4 and samples_u8.shape[0] == 1 and samples_u8.shape[-1] == 3
    assert samples_u8.dtype == jnp.uint8
    H, W, C = samples_u8.shape[1:]

    # squeeze(0) + permute(2, 0, 1), kept in uint8 (4x cheaper than an f32 transpose;
    # the /255 is folded into the kernel's per-channel scale).
    x_u8 = jnp.transpose(samples_u8[0], (2, 0, 1))   # (3, H, W) uint8

    wy_np, wx_np = _resize_crop_matrices(H, W, size, crop_seed)

    # Lane-dense output: pad output columns to a multiple of 128 via zero columns
    # in Wx^T; slice back to `size` in the wrapper (extra MXU columns are free here).
    P = ((size + _LANE - 1) // _LANE) * _LANE
    wxt_np = np.zeros((W, P), dtype=np.float32)
    wxt_np[:, :size] = wx_np.T

    wy = jnp.asarray(wy_np, dtype=jnp.bfloat16)     # (size, H)
    wxt = jnp.asarray(wxt_np, dtype=jnp.bfloat16)   # (W, P)

    scales = 1.0 / (255.0 * _STD)   # folds the /255 into the normalize affine
    shifts = -_MEAN / _STD

    # Explicit VMEM budget (single-step kernel, whole uint8 image resident).
    # TODO(synk): very large frames (e.g. 4K on v7x's 64 MiB VMEM) would need a grid
    # axis tiling H (the K-dim of Wy @ x) with a scratch accumulator instead.
    need = (C * H * W                    # uint8 image
            + 2 * (size * H + W * P)     # bf16 weight matrices
            + 4 * C * size * P)          # f32 output
    vmem_limit = int(min(100 * 2**20, max(32 * 2**20, 4 * need)))

    out = pl.pallas_call(
        _make_kernel(C, scales, shifts),
        out_shape=jax.ShapeDtypeStruct((C, size, P), jnp.float32),
        in_specs=[
            pl.BlockSpec(memory_space=pltpu.MemorySpace.VMEM),  # image (3, H, W) uint8
            pl.BlockSpec(memory_space=pltpu.MemorySpace.VMEM),  # Wy   (size, H)  bf16
            pl.BlockSpec(memory_space=pltpu.MemorySpace.VMEM),  # Wx^T (W, P)     bf16
        ],
        out_specs=pl.BlockSpec(memory_space=pltpu.MemorySpace.VMEM),
        compiler_params=pltpu.CompilerParams(vmem_limit_bytes=vmem_limit),
    )(x_u8, wy, wxt)

    return out[:, :, :size][None]   # unsqueeze(0) -> (1, 3, size, size)


if __name__ == "__main__":
    size = 16
    # Matches generate_dummy_inputs: (1, h*2+1, w*3-10, 3) uint8 in [0, 255).
    h, w = size, size
    key = jax.random.PRNGKey(0)
    samples = jax.random.randint(
        key, (1, h * 2 + 1, w * 3 - 10, 3), 0, 255, dtype=jnp.int32
    ).astype(jnp.uint8)

    out = jax.block_until_ready(image_transform(samples, size))
    assert out.shape == (1, 3, size, size), out.shape
    assert out.dtype == jnp.float32
    assert bool(jnp.all(jnp.isfinite(out)))

    # Pure-numpy f32 reference of the same math (same resize/crop matrices).
    x_np = np.asarray(samples)[0].astype(np.float32).transpose(2, 0, 1)   # (3, H, W)
    wy_np, wx_np = _resize_crop_matrices(x_np.shape[1], x_np.shape[2], size, 0)
    ref = np.einsum('sh,chw,tw->cst', wy_np, x_np, wx_np)
    ref = ref / (255.0 * _STD[:, None, None]) - (_MEAN / _STD)[:, None, None]
    err = float(np.max(np.abs(np.asarray(out[0]) - ref)))
    assert err < 0.1, f"max abs error vs f32 reference too large: {err}"

    print("KERNEL_OK")
</pallas_src>

<mosaic_0001>
module attributes {stable_mosaic.version = 11 : i64} {
  func.func @kernel(%arg0: memref<3x33x38xi8, #tpu.memory_space<vmem>>, %arg1: memref<16x33xbf16, #tpu.memory_space<vmem>>, %arg2: memref<38x128xbf16, #tpu.memory_space<vmem>>, %arg3: memref<3x16x128xf32, #tpu.memory_space<vmem>>) attributes {dimension_semantics = [], scalar_prefetch = 0 : i64, scratch_operands = 0 : i64, tpu.core_type = #tpu.core_type<tc>} {
    %c0 = arith.constant 0 : index
    %c0_0 = arith.constant 0 : index
    %0 = vector.load %arg1[%c0, %c0_0] : memref<16x33xbf16, #tpu.memory_space<vmem>>, vector<16x33xbf16>
    %c0_1 = arith.constant 0 : index
    %c0_2 = arith.constant 0 : index
    %1 = vector.load %arg2[%c0_1, %c0_2] : memref<38x128xbf16, #tpu.memory_space<vmem>>, vector<38x128xbf16>
    %c0_3 = arith.constant 0 : index
    %c0_4 = arith.constant 0 : index
    %c0_5 = arith.constant 0 : index
    %2 = vector.load %arg0[%c0_3, %c0_4, %c0_5] : memref<3x33x38xi8, #tpu.memory_space<vmem>>, vector<1x33x38xi8>
    %3 = vector.shape_cast %2 : vector<1x33x38xi8> to vector<33x38xi8>
    %4 = arith.uitofp %3 : vector<33x38xi8> to vector<33x38xf32>
    %5 = arith.truncf %4 : vector<33x38xf32> to vector<33x38xbf16>
    %cst = arith.constant dense<0.000000e+00> : vector<16x38xf32>
    %6 = tpu.matmul %0, %5, %cst {dimension_numbers = #tpu.dot_dimension_numbers<[1], [0], [0], [1], [0, 0, 1, 1], [], []>} : vector<16x33xbf16>, vector<33x38xbf16>, vector<16x38xf32> -> vector<16x38xf32>
    %7 = arith.truncf %6 : vector<16x38xf32> to vector<16x38xbf16>
    %cst_6 = arith.constant dense<0.000000e+00> : vector<16x128xf32>
    %8 = tpu.matmul %7, %1, %cst_6 {dimension_numbers = #tpu.dot_dimension_numbers<[1], [0], [0], [1], [0, 0, 1, 1], [], []>} : vector<16x38xbf16>, vector<38x128xbf16>, vector<16x128xf32> -> vector<16x128xf32>
    %cst_7 = arith.constant 0.0171247534 : f32
    %9 = vector.broadcast %cst_7 : f32 to vector<16x128xf32>
    %10 = arith.mulf %8, %9 : vector<16x128xf32>
    %cst_8 = arith.constant -2.11790395 : f32
    %11 = vector.broadcast %cst_8 : f32 to vector<16x128xf32>
    %12 = arith.addf %10, %11 : vector<16x128xf32>
    %c0_9 = arith.constant 0 : index
    %c0_10 = arith.constant 0 : index
    %c0_11 = arith.constant 0 : index
    %13 = vector.load %arg3[%c0_9, %c0_10, %c0_11] : memref<3x16x128xf32, #tpu.memory_space<vmem>>, vector<1x16x128xf32>
    %14 = vector.shape_cast %13 : vector<1x16x128xf32> to vector<16x128xf32>
    %15 = vector.shape_cast %12 : vector<16x128xf32> to vector<1x16x128xf32>
    tpu.vector_store %arg3[%c0_9, %c0_10, %c0_11], %15 {strides = array<i32>} : memref<3x16x128xf32, #tpu.memory_space<vmem>>, vector<1x16x128xf32>,
    %c1 = arith.constant 1 : index
    %c0_12 = arith.constant 0 : index
    %c0_13 = arith.constant 0 : index
    %16 = vector.load %arg0[%c1, %c0_12, %c0_13] : memref<3x33x38xi8, #tpu.memory_space<vmem>>, vector<1x33x38xi8>
    %17 = vector.shape_cast %16 : vector<1x33x38xi8> to vector<33x38xi8>
    %18 = arith.uitofp %17 : vector<33x38xi8> to vector<33x38xf32>
    %19 = arith.truncf %18 : vector<33x38xf32> to vector<33x38xbf16>
    %cst_14 = arith.constant dense<0.000000e+00> : vector<16x38xf32>
    %20 = tpu.matmul %0, %19, %cst_14 {dimension_numbers = #tpu.dot_dimension_numbers<[1], [0], [0], [1], [0, 0, 1, 1], [], []>} : vector<16x33xbf16>, vector<33x38xbf16>, vector<16x38xf32> -> vector<16x38xf32>
    %21 = arith.truncf %20 : vector<16x38xf32> to vector<16x38xbf16>
    %cst_15 = arith.constant dense<0.000000e+00> : vector<16x128xf32>
    %22 = tpu.matmul %21, %1, %cst_15 {dimension_numbers = #tpu.dot_dimension_numbers<[1], [0], [0], [1], [0, 0, 1, 1], [], []>} : vector<16x38xbf16>, vector<38x128xbf16>, vector<16x128xf32> -> vector<16x128xf32>
    %cst_16 = arith.constant 0.0175070018 : f32
    %23 = vector.broadcast %cst_16 : f32 to vector<16x128xf32>
    %24 = arith.mulf %22, %23 : vector<16x128xf32>
    %cst_17 = arith.constant -2.03571415 : f32
    %25 = vector.broadcast %cst_17 : f32 to vector<16x128xf32>
    %26 = arith.addf %24, %25 : vector<16x128xf32>
    %c1_18 = arith.constant 1 : index
    %c0_19 = arith.constant 0 : index
    %c0_20 = arith.constant 0 : index
    %27 = vector.load %arg3[%c1_18, %c0_19, %c0_20] : memref<3x16x128xf32, #tpu.memory_space<vmem>>, vector<1x16x128xf32>
    %28 = vector.shape_cast %27 : vector<1x16x128xf32> to vector<16x128xf32>
    %29 = vector.shape_cast %26 : vector<16x128xf32> to vector<1x16x128xf32>
    tpu.vector_store %arg3[%c1_18, %c0_19, %c0_20], %29 {strides = array<i32>} : memref<3x16x128xf32, #tpu.memory_space<vmem>>, vector<1x16x128xf32>,
    %c2 = arith.constant 2 : index
    %c0_21 = arith.constant 0 : index
    %c0_22 = arith.constant 0 : index
    %30 = vector.load %arg0[%c2, %c0_21, %c0_22] : memref<3x33x38xi8, #tpu.memory_space<vmem>>, vector<1x33x38xi8>
    %31 = vector.shape_cast %30 : vector<1x33x38xi8> to vector<33x38xi8>
    %32 = arith.uitofp %31 : vector<33x38xi8> to vector<33x38xf32>
    %33 = arith.truncf %32 : vector<33x38xf32> to vector<33x38xbf16>
    %cst_23 = arith.constant dense<0.000000e+00> : vector<16x38xf32>
    %34 = tpu.matmul %0, %33, %cst_23 {dimension_numbers = #tpu.dot_dimension_numbers<[1], [0], [0], [1], [0, 0, 1, 1], [], []>} : vector<16x33xbf16>, vector<33x38xbf16>, vector<16x38xf32> -> vector<16x38xf32>
    %35 = arith.truncf %34 : vector<16x38xf32> to vector<16x38xbf16>
    %cst_24 = arith.constant dense<0.000000e+00> : vector<16x128xf32>
    %36 = tpu.matmul %35, %1, %cst_24 {dimension_numbers = #tpu.dot_dimension_numbers<[1], [0], [0], [1], [0, 0, 1, 1], [], []>} : vector<16x38xbf16>, vector<38x128xbf16>, vector<16x128xf32> -> vector<16x128xf32>
    %cst_25 = arith.constant 0.0174291935 : f32
    %37 = vector.broadcast %cst_25 : f32 to vector<16x128xf32>
    %38 = arith.mulf %36, %37 : vector<16x128xf32>
    %cst_26 = arith.constant -1.80444443 : f32
    %39 = vector.broadcast %cst_26 : f32 to vector<16x128xf32>
    %40 = arith.addf %38, %39 : vector<16x128xf32>
    %c2_27 = arith.constant 2 : index
    %c0_28 = arith.constant 0 : index
    %c0_29 = arith.constant 0 : index
    %41 = vector.load %arg3[%c2_27, %c0_28, %c0_29] : memref<3x16x128xf32, #tpu.memory_space<vmem>>, vector<1x16x128xf32>
    %42 = vector.shape_cast %41 : vector<1x16x128xf32> to vector<16x128xf32>
    %43 = vector.shape_cast %40 : vector<16x128xf32> to vector<1x16x128xf32>
    tpu.vector_store %arg3[%c2_27, %c0_28, %c0_29], %43 {strides = array<i32>} : memref<3x16x128xf32, #tpu.memory_space<vmem>>, vector<1x16x128xf32>,
    return
  }
}

</mosaic_0001>

<bundles_post_ra>
// kernel: tpu_custom_call.1
= control target key start
LH: loop header
LB: loop body
LE: loop exit
PB: predicated region body
PF: predicated region fallthrough
CT: control target
= control target key end

     0   :  { %8 = vsyncpa [#allocation3], 0  ;;  %s825_s0 = inlined_call_operand.hbm [shape: u8[3,33,38], index: 0, kind: input, shape index: {}]   ;;  %s826_s1 = inlined_call_operand.hbm [shape: bf16[16,33], index: 1, kind: input, shape index: {}]   ;;  %s827_s2 = inlined_call_operand.hbm [shape: bf16[38,128], index: 2, kind: input, shape index: {}]   ;;  %s828_s3 = inlined_call_operand.hbm [shape: f32[3,16,128], index: 3, kind: output, shape index: {}]  }
   0x1   :  { %9 = vsyncpa [#allocation6], 0 }
   0x2   :  { %10 = vsyncpa [#allocation4], 0  ;;  %s692_s12 = smov [#allocation5]   ;;  %s598_s16 = scalar_lea.hbm %s826_s1, 128 }
   0x3   :  { %s28_s13 = sshll.u32 %s692_s12, 4  ;;  %p599_p0 = scmp.ne.s32.totalorder %s826_s1, %s598_s16  ;;  %s29_s13 = int_to_ptr.vmem [resolvable:$true] %s28_s13 }
   0x4   :  { %p602_p1 = scmp.lt.u32.totalorder %s598_s16, %s826_s1 }
   0x6   :  { %p604_p2 = pnand %p602_p1, %p599_p0 }
   0x8   :  { %607 = shalt.err (!%p604_p2)
}
   0x9   :  { %s608_s21 = scalar_lea.vmem %s29_s13, 128  ;;  %p613_p4 = scmp.lt.s32.totalorder %s29_s13, %s29_s13 }
   0xa   :  { %p609_p3 = scmp.ne.s32.totalorder %s29_s13, %s608_s21  ;;  %p614_p5 = scmp.lt.s32.totalorder %s608_s21, %s608_s21 }
   0xc   :  { %p615_p6 = por %p614_p5, %p613_p4 }
   0xe   :  { %p616_p7 = pnand %p615_p6, %p609_p3 }
  0x10   :  { %619 = shalt.err (!%p616_p7)
}
  0x11   :  { %s693_s22 = smov 64   ;;  %s694_s23 = smov 4  }
  0x12   :  { %34 = dma.hbm_to_vmem [thread:$0]  %s826_s1, 128, %s29_s13, [#allocation6], %s693_s22, %s693_s22, %s694_s23  }
  0x13   :  { %s695_s26 = smov [#allocation2]   ;;  %s620_s30 = scalar_lea.hbm %s825_s0, 480 }
  0x14   :  { %s16_s27 = sshll.u32 %s695_s26, 4  ;;  %p621_p8 = scmp.ne.s32.totalorder %s825_s0, %s620_s30  ;;  %s17_s27 = int_to_ptr.vmem [resolvable:$true] %s16_s27 }
  0x15   :  { %p624_p9 = scmp.lt.u32.totalorder %s620_s30, %s825_s0 }
  0x17   :  { %p626_p10 = pnand %p624_p9, %p621_p8 }
  0x19   :  { %629 = shalt.err (!%p626_p10)
}
  0x1a   :  { %s630_s8 = scalar_lea.vmem %s17_s27, 480  ;;  %p635_p12 = scmp.lt.s32.totalorder %s17_s27, %s17_s27 }
  0x1b   :  { %p631_p11 = scmp.ne.s32.totalorder %s17_s27, %s630_s8  ;;  %p636_p13 = scmp.lt.s32.totalorder %s630_s8, %s630_s8 }
  0x1d   :  { %p637_p0 = por %p636_p13, %p635_p12 }
  0x1f   :  { %p638_p1 = pnand %p637_p0, %p631_p11 }
  0x21   :  { %641 = shalt.err (!%p638_p1)
}
  0x22   :  { %s696_s1 = smov 32   ;;  %s697_s9 = smov 2  }
  0x23   :  { %22 = dma.hbm_to_vmem [thread:$0]  %s825_s0, 480, %s17_s27, [#allocation3], %s696_s1, %s696_s1, %s697_s9  }
  0x24   :  { %s698_s12 = smov [#allocation7]   ;;  %s642_s16 = scalar_lea.hbm %s827_s2, 320 }
  0x25   :  { %s40_s13 = sshll.u32 %s698_s12, 4  ;;  %p643_p2 = scmp.ne.s32.totalorder %s827_s2, %s642_s16  ;;  %s41_s13 = int_to_ptr.vmem [resolvable:$true] %s40_s13 }
  0x26   :  { %p646_p3 = scmp.lt.u32.totalorder %s642_s16, %s827_s2 }
  0x28   :  { %p648_p4 = pnand %p646_p3, %p643_p2 }
  0x2a   :  { %651 = shalt.err (!%p648_p4)
}
  0x2b   :  { %s652_s21 = scalar_lea.vmem %s41_s13, 320  ;;  %p657_p6 = scmp.lt.s32.totalorder %s41_s13, %s41_s13 }
  0x2c   :  { %p653_p5 = scmp.ne.s32.totalorder %s41_s13, %s652_s21  ;;  %p658_p7 = scmp.lt.s32.totalorder %s652_s21, %s652_s21 }
  0x2e   :  { %p659_p8 = por %p658_p7, %p657_p6 }
  0x30   :  { %p660_p9 = pnand %p659_p8, %p653_p5 }
  0x32   :  { %663 = shalt.err (!%p660_p9)
}
  0x33   :  { %46 = dma.hbm_to_vmem [thread:$0]  %s827_s2, 320, %s41_s13, [#allocation6], %s693_s22, %s693_s22, %s694_s23  }
  0x34   :  { %686 = dma.done.wait [#allocation3], 480  }
  0x35   :  { %687 = vsyncadd [#allocation3], 4294966816 }
  0x36   :  { %688 = dma.done.wait [#allocation6], 448  }
  0x37   :  { %689 = vsyncadd [#allocation6], 4294966848  ;;  %v699_v0 = vmov 0.0   ;;  %vm700_vm0 = vmmov 0   ;;  %v64_v1 = vld [vmem:[#allocation2] sm:$0x3] }
  0x38   :  { %521 = vmatprep.subr.bf16.mxu0 %v699_v0  ;;  %527 = vmatprep.mubr.msk.bf16.mxu0 %vm700_vm0, %v699_v0  ;;  %v65_v2 = vld [vmem:[#allocation2 + $0x2] sm:$0x3]  ;;  %v66_v3 = vld [vmem:[#allocation2 + $0x4] sm:$0x3]  ;;  %v69_v4 = vunpack.c.l.u8.bf16 %v64_v1  ;;  %v67_v6 = vld [vmem:[#allocation2 + $0x6] sm:$0x3] }
  0x39   :  { %531 = vmatprep.subr.bf16.mxu1 %v699_v0  ;;  %537 = vmatprep.mubr.msk.bf16.mxu1 %vm700_vm0, %v699_v0  ;;  %v70_v5 = vunpack.c.l.u8.bf16 %v65_v2  ;;  %v71_v7 = vunpack.c.l.u8.bf16 %v66_v3  ;;  %v68_v8 = vld [vmem:[#allocation2 + $0x8] sm:$0x1]  ;;  %v72_v9 = vunpack.c.l.u8.bf16 %v67_v6  ;;  %vm98_vm1 = vcmask 1040384   ;;  %v217_v14 = vld [vmem:[#allocation2 + $0xa] sm:$0x3]  ;;  %v777_v19 = vld [vmem:[#allocation7 + $0x8] sm:$0xff]  }
  0x3a   :  { %v73_v10 = vunpack.c.l.u8.bf16 %v68_v8  ;;  %v218_v15 = vld [vmem:[#allocation2 + $0xc] sm:$0x3]  ;;  %v701_v16 = vmov 0   ;;  %v222_v21 = vunpack.c.l.u8.bf16 %v217_v14  ;;  %v219_v23 = vld [vmem:[#allocation2 + $0xe] sm:$0x3]  ;;  %v594_v26 = vld [vmem:[#allocation5] sm:$0xff]  }
  0x3b   :  { %v479_v11 = vcombine.low %v69_v4, %v70_v5  ;;  %v480_v12 = vcombine.low %v71_v7, %v72_v9  ;;  %v100_v17 = vsel %vm98_vm1, 65535, %v701_v16  ;;  %v774_v18 = vld [vmem:[#allocation7] sm:$0xff]   ;;  %v223_v22 = vunpack.c.l.u8.bf16 %v218_v15  ;;  %v220_v24 = vld [vmem:[#allocation2 + $0x10] sm:$0x3]  ;;  %v221_v25 = vld [vmem:[#allocation2 + $0x12] sm:$0x1] }
  0x3c   :  { %v481_v13 = vcombine.low %v73_v10, %v73_v10  ;;  %532 = vmatpush3.bf16.msra.mxu1 %v774_v18  ;;  %vm94_vm2 = vcmask 269312   ;;  %v224_v28 = vunpack.c.l.u8.bf16 %v219_v23  ;;  %v225_v29 = vunpack.c.l.u8.bf16 %v220_v24  ;;  %v339_v33 = vld [vmem:[#allocation2 + $0x14] sm:$0x3]  ;;  %v340_v34 = vld [vmem:[#allocation2 + $0x16] sm:$0x3]  ;;  %s702_s2 = smov [#allocation8]  }
  0x3d   :  { %522 = vmatpush3.bf16.msra.mxu0 %v479_v11  ;;  %533 = vmatprep.subr.bf16.mxu1 %v699_v0  ;;  %v487_v27 = vcombine.low %v222_v21, %v223_v22  ;;  %v226_v30 = vunpack.c.l.u8.bf16 %v221_v25  ;;  %v344_v36 = vunpack.c.l.u8.bf16 %v339_v33  ;;  %v345_v37 = vunpack.c.l.u8.bf16 %v340_v34  ;;  %v341_v38 = vld [vmem:[#allocation2 + $0x18] sm:$0x3]  ;;  %v342_v39 = vld [vmem:[#allocation2 + $0x1a] sm:$0x3]  ;;  %v343_v40 = vld [vmem:[#allocation2 + $0x1c] sm:$0x1] }
  0x3e   :  { %523 = vmatprep.subr.bf16.mxu0 %v699_v0  ;;  %v102_v20 = vand.u32 %v481_v13, %v100_v17  ;;  %v488_v31 = vcombine.low %v224_v28, %v225_v29  ;;  %v346_v42 = vunpack.c.l.u8.bf16 %v341_v38  ;;  %v347_v43 = vunpack.c.l.u8.bf16 %v342_v39  ;;  %v597_v48 = vld [vmem:[#allocation7 + $0x10] ss:$0 sps:$4 sm:$0x77]   ;;  %s465_s22 = sshll.u32 %s702_s2, 4  ;;  %s466_s22 = int_to_ptr.vmem [resolvable:$true] %s465_s22 }
  0x3f   :  { %v489_v32 = vcombine.low %v226_v30, %v226_v30  ;;  %v492_v41 = vcombine.low %v344_v36, %v345_v37  ;;  %v348_v44 = vunpack.c.l.u8.bf16 %v343_v40  ;;  %vm165_vm3 = vcmask 1042432   ;;  %s664_s23 = scalar_lea.vmem %s466_s22, 768  ;;  %p669_p11 = scmp.lt.s32.totalorder %s466_s22, %s466_s22 }
  0x40   :  { %534 = vmatpush3.bf16.msra.mxu1 %v777_v19  ;;  %v493_v45 = vcombine.low %v346_v42, %v347_v43  ;;  %v167_v49 = vsel %vm165_vm3, %v597_v48, 0  ;;  %vm161_vm4 = vcmask 310272   ;;  %p665_p10 = scmp.ne.s32.totalorder %s466_s22, %s664_s23  ;;  %p670_p12 = scmp.lt.s32.totalorder %s664_s23, %s664_s23 }
  0x41   :  { %524 = vmatpush3.bf16.msra.mxu0 %v480_v12  ;;  %535 = vmatprep.subr.bf16.mxu1 %v699_v0  ;;  %v243_v35 = vand.u32 %v489_v32, %v100_v17  ;;  %v494_v46 = vcombine.low %v348_v44, %v348_v44 }
  0x42   :  { %525 = vmatprep.subr.bf16.mxu0 %v699_v0  ;;  %p671_p13 = por %p670_p12, %p669_p11 }
  0x43   :  { %v365_v47 = vand.u32 %v494_v46, %v100_v17 }
  0x44   :  { %536 = vmatpush3.bf16.msra.mxu1 %v167_v49  ;;  %p672_p0 = pnand %p671_p13, %p665_p10 }
  0x45   :  { %526 = vmatpush3.bf16.msra.mxu0 %v102_v20  ;;  %551 = vmatprep.subr.bf16.mxu1 %v699_v0 }
  0x46   :  { %541 = vmatprep.subr.bf16.mxu0 %v699_v0 }
  0x48   :  { %528 = vmatmul.mubr.msk.bf16.vlgmr.msra.gmra.mrb[0].mxu0 %vm94_vm2, %v594_v26 }
  0x49   :  { %542 = vmatpush3.bf16.msra.mxu0 %v487_v27  ;;  %547 = vmatprep.mubr.msk.bf16.mxu0 %vm700_vm0, %v699_v0 }
  0x4a   :  { %543 = vmatprep.subr.bf16.mxu0 %v699_v0 }
  0x4d   :  { %544 = vmatpush3.bf16.msra.mxu0 %v488_v31 }
  0x4e   :  { %545 = vmatprep.subr.bf16.mxu0 %v699_v0 }
  0x51   :  { %546 = vmatpush3.bf16.msra.mxu0 %v243_v35 }
  0x52   :  { %561 = vmatprep.subr.bf16.mxu0 %v699_v0 }
  0x54   :  { %548 = vmatmul.mubr.msk.bf16.vlgmr.msra.gmra.mrb[4].mxu0 %vm94_vm2, %v594_v26 }
  0x55   :  { %562 = vmatpush3.bf16.msra.mxu0 %v492_v41  ;;  %567 = vmatprep.mubr.msk.bf16.mxu0 %vm700_vm0, %v699_v0 }
  0x56   :  { %563 = vmatprep.subr.bf16.mxu0 %v699_v0 }
  0x59   :  { %564 = vmatpush3.bf16.msra.mxu0 %v493_v45 }
  0x5a   :  { %565 = vmatprep.subr.bf16.mxu0 %v699_v0 }
  0x5d   :  { %566 = vmatpush3.bf16.msra.mxu0 %v365_v47 }
  0x60   :  { %568 = vmatmul.mubr.msk.bf16.vlgmr.msra.gmra.mrb[8].mxu0 %vm94_vm2, %v594_v26 }
 0x11b   :  { %v138_v50 = vpop.f32.mrb[0].mxu0 }
 0x11c   :  { %v529_v51 = vpop.f32.mrb[1].mxu0 }
 0x11d   :  { %v141_v52 = vpop.f32.mrb[2].mxu0 }
 0x11e   :  { %v145_v53 = vpack.c.bf16 %v141_v52, %v138_v50  ;;  %v530_v54 = vpop.f32.mrb[3].mxu0 }
 0x120   :  { %538 = vmatmul.mubr.msk.bf16.vlgmr.msra.gmra.mrb[0].mxu1 %vm161_vm4, %v145_v53 }
 0x121   :  { %552 = vmatpush3.bf16.msra.mxu1 %v774_v18  ;;  %557 = vmatprep.mubr.msk.bf16.mxu1 %vm700_vm0, %v699_v0 }
 0x122   :  { %553 = vmatprep.subr.bf16.mxu1 %v699_v0 }
 0x125   :  { %554 = vmatpush3.bf16.msra.mxu1 %v777_v19 }
 0x126   :  { %555 = vmatprep.subr.bf16.mxu1 %v699_v0 }
 0x127   :  { %v279_v55 = vpop.f32.mrb[4].mxu0 }
 0x128   :  { %v549_v56 = vpop.f32.mrb[5].mxu0 }
 0x129   :  { %v282_v57 = vpop.f32.mrb[6].mxu0  ;;  %556 = vmatpush3.bf16.msra.mxu1 %v167_v49 }
 0x12a   :  { %v286_v58 = vpack.c.bf16 %v282_v57, %v279_v55  ;;  %v550_v59 = vpop.f32.mrb[7].mxu0  ;;  %571 = vmatprep.subr.bf16.mxu1 %v699_v0 }
 0x12c   :  { %558 = vmatmul.mubr.msk.bf16.vlgmr.msra.gmra.mrb[4].mxu1 %vm161_vm4, %v286_v58 }
 0x12d   :  { %572 = vmatpush3.bf16.msra.mxu1 %v774_v18  ;;  %577 = vmatprep.mubr.msk.bf16.mxu1 %vm700_vm0, %v699_v0 }
 0x12e   :  { %573 = vmatprep.subr.bf16.mxu1 %v699_v0 }
 0x131   :  { %574 = vmatpush3.bf16.msra.mxu1 %v777_v19 }
 0x132   :  { %575 = vmatprep.subr.bf16.mxu1 %v699_v0 }
 0x133   :  { %v401_v60 = vpop.f32.mrb[8].mxu0 }
 0x134   :  { %v569_v61 = vpop.f32.mrb[9].mxu0 }
 0x135   :  { %v404_v62 = vpop.f32.mrb[10].mxu0  ;;  %576 = vmatpush3.bf16.msra.mxu1 %v167_v49 }
 0x136   :  { %v408_v63 = vpack.c.bf16 %v404_v62, %v401_v60  ;;  %v570_v1 = vpop.f32.mrb[11].mxu0 }
 0x138   :  { %578 = vmatmul.mubr.msk.bf16.vlgmr.msra.gmra.mrb[8].mxu1 %vm161_vm4, %v408_v63 }
 0x1f3   :  { %v203_v2 = vpop.f32.mrb[0].mxu1 }
 0x1f4   :  { %v210_v3 = vmul.f32 0.017124753, %v203_v2  ;;  %v539_v4 = vpop.f32.mrb[1].mxu1 }
 0x1f5   :  { %v206_v5 = vpop.f32.mrb[2].mxu1 }
 0x1f6   :  { %v212_v6 = vadd.f32 -2.117904, %v210_v3  ;;  %v211_v7 = vmul.f32 0.017124753, %v206_v5  ;;  %v540_v8 = vpop.f32.mrb[3].mxu1 }
 0x1f8   :  { %214 = vst [vmem:[#allocation8] sm:$0xff] %v212_v6  ;;  %v213_v9 = vadd.f32 -2.117904, %v211_v7 }
 0x1fa   :  { %215 = vst [vmem:[#allocation8 + $0x8] sm:$0xff] %v213_v9 }
 0x1ff   :  { %v324_v10 = vpop.f32.mrb[4].mxu1 }
 0x200   :  { %v331_v0 = vmul.f32 0.017507002, %v324_v10  ;;  %v559_v11 = vpop.f32.mrb[5].mxu1 }
 0x201   :  { %v327_v12 = vpop.f32.mrb[6].mxu1 }
 0x202   :  { %v333_v13 = vadd.f32 -2.0357141, %v331_v0  ;;  %v332_v14 = vmul.f32 0.017507002, %v327_v12  ;;  %v560_v15 = vpop.f32.mrb[7].mxu1 }
 0x204   :  { %336 = vst [vmem:[#allocation8 + $0x10] sm:$0xff] %v333_v13  ;;  %v334_v16 = vadd.f32 -2.0357141, %v332_v14 }
 0x206   :  { %337 = vst [vmem:[#allocation8 + $0x18] sm:$0xff] %v334_v16 }
 0x20b   :  { %v446_v17 = vpop.f32.mrb[8].mxu1 }
 0x20c   :  { %v453_v18 = vmul.f32 0.017429193, %v446_v17  ;;  %v579_v19 = vpop.f32.mrb[9].mxu1 }
 0x20d   :  { %v449_v20 = vpop.f32.mrb[10].mxu1 }
 0x20e   :  { %v455_v21 = vadd.f32 -1.8044444, %v453_v18  ;;  %v454_v22 = vmul.f32 0.017429193, %v449_v20  ;;  %v580_v23 = vpop.f32.mrb[11].mxu1 }
 0x210   :  { %458 = vst [vmem:[#allocation8 + $0x20] sm:$0xff] %v455_v21  ;;  %v456_v24 = vadd.f32 -1.8044444, %v454_v22 }
 0x212   :  { %459 = vst [vmem:[#allocation8 + $0x28] sm:$0xff] %v456_v24 }
 0x213   :  { %675 = shalt.err (!%p672_p0)
}
 0x214   :  { %s676_s27 = scalar_lea.hbm %s828_s3, 768 }
 0x215   :  { %p677_p1 = scmp.ne.s32.totalorder %s828_s3, %s676_s27  ;;  %p680_p2 = scmp.lt.u32.totalorder %s676_s27, %s828_s3 }
 0x217   :  { %p682_p3 = pnand %p680_p2, %p677_p1 }
 0x219   :  { %685 = shalt.err (!%p682_p3)
}
 0x21a   :  { %s703_s5 = smov 128   ;;  %s704_s6 = smov 8  }
 0x21b   :  { %471 = dma.vmem_to_hbm [thread:$0]  %s466_s22, 768, %s828_s3, [#allocation4], %s703_s5, %s703_s5, %s704_s6  }
 0x21c   :  { %690 = dma.done.wait [#allocation4], 768  }
 0x21d   :  { %691 = vsyncadd [#allocation4], 4294966528 }
 0x21e   :  { %475 = vsyncpa [#allocation3], 1 }
 0x21f   :  { %476 = vsyncpa [#allocation6], 1 }
 0x220   :  { %477 = vsyncpa [#allocation4], 1 }

</bundles_post_ra>
